<compile_context>
chip_gen: v5e
topology: v5e:2x2
jax: 0.10.0
libtpu: 0.0.40
codegen_flags: <defaults>
</compile_context>

<pallas_src>
import functools

import numpy as np
import jax
import jax.numpy as jnp
from jax.experimental import pallas as pl
from jax.experimental.pallas import tpu as pltpu


COMPUTE_DTYPE = jnp.bfloat16          # MXU-native input dtype on v5e/v6e/v7x
_VMEM_LIMIT_BYTES = 48 * 1024 * 1024  # < v7x 64 MiB physical, > 32 MiB scoped default


# ------------------------------ tiling helpers -------------------------------

def _pick_tile(dim, prefs):
    """Largest preferred tile that evenly divides `dim`, else the full dim."""
    for p in prefs:
        if dim % p == 0:
            return p
    return dim


_TM_PREFS = (512, 256, 128, 64, 32, 16, 8)   # sublane-aligned row tiles (256+ for v6e/v7x MXU)
_TN_PREFS = (512, 256, 128)                  # lane-aligned output-channel tiles
_TK_PREFS = (512, 256, 128)                  # lane-aligned reduction tiles
_WBLK_PREFS = (8, 4, 2, 1)                   # windows processed per attention grid step


# ----------------------------- Pallas kernels -------------------------------

def _linear_kernel(*refs, activation, fuse_ln, fuse_res, eps, single_k):
    """Tiled y = [LN](x) @ w + b [+GELU] [+residual] with f32 accumulation."""
    x_ref, w_ref, b_ref = refs[0], refs[1], refs[2]
    idx = 3
    if fuse_ln:
        g_ref, be_ref = refs[idx], refs[idx + 1]
        idx += 2
    if fuse_res:
        r_ref = refs[idx]
        idx += 1
    o_ref = refs[idx]
    idx += 1
    if fuse_ln:
        ln_ref = refs[idx]        # (tm, K) bf16 VMEM cache of the normalized rows
        idx += 1
    if not single_k:
        acc_ref = refs[idx]       # (tm, tn) f32 accumulator
        idx += 1

    if fuse_ln:
        # LayerNorm prologue computed ONCE per row block (j == 0) and cached in VMEM;
        # reused for every output-column tile j > 0 (j axis is "arbitrary" so the
        # whole j sweep of a row block stays on one core).
        @pl.when(pl.program_id(1) == 0)
        def _():
            xf = x_ref[...].astype(jnp.float32)
            mean = jnp.mean(xf, axis=-1, keepdims=True)
            xc = xf - mean
            var = jnp.mean(xc * xc, axis=-1, keepdims=True)
            xn = xc * jax.lax.rsqrt(var + eps)
            ln_ref[...] = (xn * g_ref[...] + be_ref[...]).astype(ln_ref.dtype)
        x = ln_ref[...]
    else:
        x = x_ref[...]

    def _epilogue(y):
        y = y + b_ref[...]
        if activation == "gelu":
            # exact (erf) GELU, matching nn.GELU default
            y = 0.5 * y * (1.0 + jax.lax.erf(y * 0.7071067811865476))
        if fuse_res:
            y = y + r_ref[...].astype(jnp.float32)
        return y.astype(o_ref.dtype)

    if single_k:
        # K fits one tile: skip the accumulator zero/+= /readback round trip.
        o_ref[...] = _epilogue(
            jnp.dot(x, w_ref[...], preferred_element_type=jnp.float32))
    else:
        k = pl.program_id(2)

        @pl.when(k == 0)
        def _():
            acc_ref[...] = jnp.zeros_like(acc_ref)

        acc_ref[...] += jnp.dot(x, w_ref[...], preferred_element_type=jnp.float32)

        @pl.when(k == pl.num_programs(2) - 1)
        def _():
            o_ref[...] = _epilogue(acc_ref[...])


def _layernorm_kernel(x_ref, g_ref, b_ref, o_ref, *, eps):
    x = x_ref[...].astype(jnp.float32)
    mean = jnp.mean(x, axis=-1, keepdims=True)
    xc = x - mean
    var = jnp.mean(xc * xc, axis=-1, keepdims=True)
    y = xc * jax.lax.rsqrt(var + eps)
    o_ref[...] = (y * g_ref[...] + b_ref[...]).astype(o_ref.dtype)


def _win_attn_kernel(*refs, nh, d, scale, masked, wblk):
    """One (batch, window-block) per grid step; WBLK windows x all heads processed here.

    Inputs: packed qkv (1,WBLK,N,3C) bf16; rel_bias (nh,N,N) bf16; mask (WBLK,N,N) bf16.
    Output: lane-dense (1,WBLK,N,C) slab.  Scratch: (N,C) f32 per-window result slab.
    """
    qkv_ref = refs[0]
    bias_ref = refs[1]
    mask_ref = refs[2] if masked else None
    o_ref = refs[-2]
    acc_ref = refs[-1]                                   # (N, C) f32 VMEM scratch

    C = nh * d
    for w in range(wblk):                                # static unroll over windows
        qkv = qkv_ref[0, w]                              # (N, 3C) bf16
        # hoist the three C-aligned slices once; heads take sub-slices of these
        q_all = qkv[:, 0:C]
        k_all = qkv[:, C:2 * C]
        v_all = qkv[:, 2 * C:3 * C]
        if masked:
            m = mask_ref[w].astype(jnp.float32)          # (N, N)

        for h in range(nh):                              # static unroll over heads
            q = q_all[:, h * d:(h + 1) * d]              # bf16 (N, d)
            k = k_all[:, h * d:(h + 1) * d]              # bf16 (N, d)
            v = v_all[:, h * d:(h + 1) * d]              # bf16 (N, d)
            # bf16 x bf16 MXU matmul, contraction on last dim of both (no k.T)
            s = jax.lax.dot_general(q, k, (((1,), (1,)), ((), ())),
                                    preferred_element_type=jnp.float32)
            s = s * scale + bias_ref[h].astype(jnp.float32)
            if masked:
                s = s + m
            s = s - jnp.max(s, axis=-1, keepdims=True)
            p = jnp.exp(s)
            p = p * pl.reciprocal(jnp.sum(p, axis=-1, keepdims=True), approx=True)
            # stream this head's result into its lane slice of the (N, C) slab
            acc_ref[:, h * d:(h + 1) * d] = jnp.dot(
                p.astype(v.dtype), v, preferred_element_type=jnp.float32)

        o_ref[0, w] = acc_ref[...].astype(o_ref.dtype)   # one lane-dense store / window


def _meanpool_kernel(x_ref, o_ref):
    x = x_ref[0].astype(jnp.float32)             # (L, C)
    o_ref[...] = jnp.mean(x, axis=0, keepdims=True)[None]


# ----------------------------- kernel wrappers -------------------------------

def pallas_linear(x, w, b=None, *, activation=None, ln=None, residual=None,
                  eps=1e-5, out_dtype=None):
    """y = [LN](x) @ w + b [+GELU] [+residual].  x:(M,K), w:(K,N) pre-transposed."""
    M, K = x.shape
    _, N = w.shape
    out_dtype = out_dtype or x.dtype
    fuse_ln = ln is not None
    fuse_res = residual is not None

    bb = (b.reshape(1, N).astype(jnp.float32) if b is not None
          else jnp.zeros((1, N), jnp.float32))

    tm = _pick_tile(M, _TM_PREFS)
    tn = _pick_tile(N, _TN_PREFS)
    tk = K if fuse_ln else _pick_tile(K, _TK_PREFS)   # LN prologue needs full K rows
    nk = K // tk
    single_k = nk == 1
    grid = (M // tm, N // tn, nk)

    if single_k:
        w_spec = pl.BlockSpec((tk, tn), lambda i, j, k: (k, j))
    else:
        # triple-buffer the streamed weight operand to hide HBM latency (v5e)
        w_spec = pl.BlockSpec((tk, tn), lambda i, j, k: (k, j),
                              pipeline_mode=pl.Buffered(3))

    in_specs = [
        pl.BlockSpec((tm, tk), lambda i, j, k: (i, k)),
        w_spec,
        pl.BlockSpec((1, tn), lambda i, j, k: (0, j)),
    ]
    inputs = [x, w, bb]
    if fuse_ln:
        g, be = ln
        in_specs += [pl.BlockSpec((1, tk), lambda i, j, k: (0, k)),
                     pl.BlockSpec((1, tk), lambda i, j, k: (0, k))]
        inputs += [g.reshape(1, K).astype(jnp.float32),
                   be.reshape(1, K).astype(jnp.float32)]
    if fuse_res:
        in_specs.append(pl.BlockSpec((tm, tn), lambda i, j, k: (i, j)))
        inputs.append(residual)

    scratch_shapes = []
    if fuse_ln:
        scratch_shapes.append(pltpu.VMEM((tm, tk), COMPUTE_DTYPE))   # cached LN rows
    if not single_k:
        scratch_shapes.append(pltpu.VMEM((tm, tn), jnp.float32))     # f32 accumulator

    # j must stay "arbitrary" when the LN prologue is cached across j tiles (megacore
    # must not split the j sweep of a row block away from j == 0).
    dims = ("parallel", "arbitrary" if fuse_ln else "parallel", "arbitrary")

    return pl.pallas_call(
        functools.partial(_linear_kernel, activation=activation, fuse_ln=fuse_ln,
                          fuse_res=fuse_res, eps=eps, single_k=single_k),
        out_shape=jax.ShapeDtypeStruct((M, N), out_dtype),
        grid=grid,
        in_specs=in_specs,
        out_specs=pl.BlockSpec((tm, tn), lambda i, j, k: (i, j)),
        scratch_shapes=scratch_shapes,
        compiler_params=pltpu.CompilerParams(
            dimension_semantics=dims, vmem_limit_bytes=_VMEM_LIMIT_BYTES),
    )(*inputs)


def pallas_layernorm(x, gamma, beta, eps=1e-5):
    shp = x.shape
    D = shp[-1]
    x2 = x.reshape(-1, D)
    rows = x2.shape[0]
    tm = _pick_tile(rows, _TM_PREFS)
    y = pl.pallas_call(
        functools.partial(_layernorm_kernel, eps=eps),
        out_shape=jax.ShapeDtypeStruct((rows, D), x.dtype),
        grid=(rows // tm,),
        in_specs=[pl.BlockSpec((tm, D), lambda i: (i, 0)),
                  pl.BlockSpec((1, D), lambda i: (0, 0)),
                  pl.BlockSpec((1, D), lambda i: (0, 0))],
        out_specs=pl.BlockSpec((tm, D), lambda i: (i, 0)),
        compiler_params=pltpu.CompilerParams(dimension_semantics=("parallel",)),
    )(x2, gamma.reshape(1, D).astype(jnp.float32),
      beta.reshape(1, D).astype(jnp.float32))
    return y.reshape(shp)


def pallas_window_attention(qkv, rel_bias, attn_mask, nh, d, scale):
    """qkv:(B,nW,N,3C) packed bf16; rel_bias:(nh,N,N) bf16; mask:(nW,N,N) bf16 or None."""
    B, nW, N, _ = qkv.shape
    C = nh * d
    masked = attn_mask is not None
    wblk = _pick_tile(nW, _WBLK_PREFS)           # windows per grid step

    in_specs = [
        pl.BlockSpec((1, wblk, N, 3 * C), lambda b, w: (b, w, 0, 0)),
        pl.BlockSpec((nh, N, N), lambda b, w: (0, 0, 0)),
    ]
    inputs = [qkv, rel_bias]
    if masked:
        in_specs.append(pl.BlockSpec((wblk, N, N), lambda b, w: (w, 0, 0)))
        inputs.append(attn_mask)

    return pl.pallas_call(
        functools.partial(_win_attn_kernel, nh=nh, d=d, scale=scale,
                          masked=masked, wblk=wblk),
        out_shape=jax.ShapeDtypeStruct((B, nW, N, C), qkv.dtype),
        grid=(B, nW // wblk),
        in_specs=in_specs,
        out_specs=pl.BlockSpec((1, wblk, N, C), lambda b, w: (b, w, 0, 0)),
        scratch_shapes=[pltpu.VMEM((N, C), jnp.float32)],
        compiler_params=pltpu.CompilerParams(
            dimension_semantics=("parallel", "parallel"),
            vmem_limit_bytes=_VMEM_LIMIT_BYTES),
    )(*inputs)


def pallas_meanpool(x):
    B, L, C = x.shape
    y = pl.pallas_call(
        _meanpool_kernel,
        out_shape=jax.ShapeDtypeStruct((B, 1, C), jnp.float32),
        grid=(B,),
        in_specs=[pl.BlockSpec((1, L, C), lambda b: (b, 0, 0))],
        out_specs=pl.BlockSpec((1, 1, C), lambda b: (b, 0, 0)),
        compiler_params=pltpu.CompilerParams(dimension_semantics=("parallel",)),
    )(x)
    return y.reshape(B, C)


# ------------------------- static Swin helper tables -------------------------

def relative_position_index(ws):
    coords = np.stack(np.meshgrid(np.arange(ws), np.arange(ws), indexing="ij"))
    coords_flat = coords.reshape(2, -1)
    rel = coords_flat[:, :, None] - coords_flat[:, None, :]
    rel = rel.transpose(1, 2, 0).astype(np.int64)
    rel[:, :, 0] += ws - 1
    rel[:, :, 1] += ws - 1
    rel[:, :, 0] *= 2 * ws - 1
    return rel.sum(-1).astype(np.int32)  # (N, N)


def compute_attn_mask(H, W, ws, shift):
    img_mask = np.zeros((1, H, W, 1), dtype=np.float32)
    cnt = 0
    for hs in (slice(0, -ws), slice(-ws, -shift), slice(-shift, None)):
        for wsl in (slice(0, -ws), slice(-ws, -shift), slice(-shift, None)):
            img_mask[:, hs, wsl, :] = cnt
            cnt += 1
    mw = (img_mask.reshape(1, H // ws, ws, W // ws, ws, 1)
          .transpose(0, 1, 3, 2, 4, 5).reshape(-1, ws * ws))
    am = mw[:, None, :] - mw[:, :, None]
    am = np.where(am != 0, -100.0, 0.0).astype(np.float32)
    return am  # (nW, N, N)


# ------------------------------ parameter init -------------------------------

def build_params(key, cfg, dtype=COMPUTE_DTYPE):
    keys = iter(jax.random.split(key, 512))

    def lin_w(k_in, n_out, std=0.02):
        # weights stored pre-transposed (K, N) in bf16 (matmul-ready)
        return (jax.random.normal(next(keys), (k_in, n_out), jnp.float32) * std).astype(dtype)

    zeros32 = lambda s: jnp.zeros(s, jnp.float32)
    ones32 = lambda s: jnp.ones(s, jnp.float32)

    ps, ed, cin = cfg["patch_size"], cfg["embed_dim"], cfg["in_chans"]
    params = {
        "patch_proj_w": lin_w(cin * ps * ps, ed),   # Conv2d(k=ps,stride=ps) as matmul
        "patch_proj_b": zeros32((ed,)),
        "patch_norm_g": ones32((ed,)),
        "patch_norm_b": zeros32((ed,)),
        "stages": [],
    }
    H = W = cfg["img_size"] // ps
    C = ed
    nstages = len(cfg["depths"])
    for si in range(nstages):
        depth, nh = cfg["depths"][si], cfg["num_heads"][si]
        blocks = []
        for bi in range(depth):
            ws_b = cfg["window_size"]
            shift = 0 if bi % 2 == 0 else ws_b // 2
            if min(H, W) <= ws_b:            # timm SwinTransformerBlock rule
                ws_b = min(H, W)
                shift = 0
            N = ws_b * ws_b
            # precompute rel_table[rel_index] -> (nh, N, N) once (static per block), bf16
            rel_table = jax.random.normal(next(keys), ((2 * ws_b - 1) ** 2, nh),
                                          jnp.float32) * 0.02
            rel_idx = relative_position_index(ws_b)
            rel_bias = jnp.transpose(
                rel_table[rel_idx.reshape(-1)].reshape(N, N, nh),
                (2, 0, 1)).astype(COMPUTE_DTYPE)
            blk = {
                "ws": ws_b, "shift": shift, "heads": nh,
                "norm1_g": ones32((C,)), "norm1_b": zeros32((C,)),
                "qkv_w": lin_w(C, 3 * C), "qkv_b": zeros32((3 * C,)),
                "proj_w": lin_w(C, C), "proj_b": zeros32((C,)),
                "rel_bias": rel_bias,                    # (nh, N, N) bf16
                "norm2_g": ones32((C,)), "norm2_b": zeros32((C,)),
                "fc1_w": lin_w(C, cfg["mlp_ratio"] * C),
                "fc1_b": zeros32((cfg["mlp_ratio"] * C,)),
                "fc2_w": lin_w(cfg["mlp_ratio"] * C, C), "fc2_b": zeros32((C,)),
            }
            if shift > 0:
                blk["attn_mask"] = jnp.asarray(
                    compute_attn_mask(H, W, ws_b, shift)).astype(COMPUTE_DTYPE)
            blocks.append(blk)
        stage = {"blocks": blocks, "downsample": None}
        if si < nstages - 1:  # PatchMerging after every stage except the last
            stage["downsample"] = {
                "norm_g": ones32((4 * C,)), "norm_b": zeros32((4 * C,)),
                "red_w": lin_w(4 * C, 2 * C),            # Linear(4C -> 2C, bias=False)
            }
            H, W, C = H // 2, W // 2, 2 * C
        params["stages"].append(stage)
    params["norm_g"], params["norm_b"] = ones32((C,)), zeros32((C,))
    params["head_w"] = lin_w(C, cfg["num_classes"])
    params["head_b"] = zeros32((cfg["num_classes"],))
    params["num_features"] = C
    return params


# --------------------------------- forward -----------------------------------

def swin_block_forward(x, blk, H, W):
    B, L, C = x.shape
    ws, shift, nh = blk["ws"], blk["shift"], blk["heads"]
    N = ws * ws
    nWh, nWw = H // ws, W // ws
    nW = nWh * nWw
    d = C // nh
    shortcut = x

    # cyclic shift + window partition (LayerNorm is row-wise so it commutes with
    # this token permutation and is fused into the qkv matmul below).
    # TODO(synk): window partition/reverse (+roll) are still XLA HBM passes; folding the
    #             gather/scatter into the qkv/proj linears' index_maps would remove them.
    xg = x.reshape(B, H, W, C)
    if shift > 0:
        xg = jnp.roll(xg, shift=(-shift, -shift), axis=(1, 2))
    xw = (xg.reshape(B, nWh, ws, nWw, ws, C)
            .transpose(0, 1, 3, 2, 4, 5).reshape(B * nW * N, C))

    # norm1 fused into qkv projection; packed (q|k|v) output fed straight to attention.
    qkv = pallas_linear(xw, blk["qkv_w"], blk["qkv_b"],
                        ln=(blk["norm1_g"], blk["norm1_b"]))
    qkv = qkv.reshape(B, nW, N, 3 * C)

    ao = pallas_window_attention(qkv, blk["rel_bias"], blk.get("attn_mask"),
                                 nh, d, scale=float(d) ** -0.5)       # (B,nW,N,C)

    ao = pallas_linear(ao.reshape(B * nW * N, C), blk["proj_w"], blk["proj_b"])

    # window reverse (+ roll back) and attention residual
    xo = (ao.reshape(B, nWh, nWw, ws, ws, C)
            .transpose(0, 1, 3, 2, 4, 5).reshape(B, H, W, C))
    if shift > 0:
        xo = jnp.roll(xo, shift=(shift, shift), axis=(1, 2))
    x = shortcut + xo.reshape(B, L, C)

    # MLP: norm2 fused into fc1 (+GELU); MLP residual fused into fc2 epilogue.
    h = pallas_linear(x.reshape(B * L, C), blk["fc1_w"], blk["fc1_b"],
                      activation="gelu", ln=(blk["norm2_g"], blk["norm2_b"]))
    x = pallas_linear(h, blk["fc2_w"], blk["fc2_b"],
                      residual=x.reshape(B * L, C)).reshape(B, L, C)
    return x


def encoder_svit_forward(params, x, cfg, dtype=COMPUTE_DTYPE):
    """x: NCHW image. Returns (cls, features) like the PyTorch module."""
    B, Cin, Himg, Wimg = x.shape
    ps = cfg["patch_size"]
    Hp, Wp = Himg // ps, Wimg // ps

    # patch_embed: Conv2d(k=ps, stride=ps) == unfold + matmul, then LayerNorm
    xp = (x.reshape(B, Cin, Hp, ps, Wp, ps)
          .transpose(0, 2, 4, 1, 3, 5).reshape(B * Hp * Wp, Cin * ps * ps)).astype(dtype)
    t = pallas_linear(xp, params["patch_proj_w"], params["patch_proj_b"])
    t = pallas_layernorm(t, params["patch_norm_g"], params["patch_norm_b"])
    t = t.reshape(B, Hp * Wp, cfg["embed_dim"])
    # TODO(synk): absolute_pos_embed is None for swin_base (ape=False) and pos_drop is
    #             identity at inference, so both are skipped here.

    H, W = Hp, Wp
    for stage in params["stages"]:
        for blk in stage["blocks"]:
            t = swin_block_forward(t, blk, H, W)
        ds = stage["downsample"]
        if ds is not None:  # PatchMerging: concat 2x2 neighborhoods, norm fused into reduction
            C = t.shape[-1]
            xg = t.reshape(B, H, W, C)
            x0 = xg[:, 0::2, 0::2, :]
            x1 = xg[:, 1::2, 0::2, :]
            x2 = xg[:, 0::2, 1::2, :]
            x3 = xg[:, 1::2, 1::2, :]
            xm = jnp.concatenate([x0, x1, x2, x3], axis=-1).reshape(-1, 4 * C)
            t = pallas_linear(xm, ds["red_w"], None, ln=(ds["norm_g"], ds["norm_b"]))
            H, W = H // 2, W // 2
            t = t.reshape(B, H * W, 2 * C)

    C = t.shape[-1]
    t = pallas_layernorm(t, params["norm_g"], params["norm_b"])
    feat = pallas_meanpool(t)                                  # (B, C) f32, avgpool + flatten
    cls = pallas_linear(feat.astype(dtype), params["head_w"], params["head_b"],
                        out_dtype=jnp.float32)
    return cls, feat


# ----------------------------------- main -------------------------------------

if __name__ == "__main__":
    cfg = dict(in_chans=3, patch_size=4, img_size=16, embed_dim=32,
               depths=(2, 2), num_heads=(2, 4), window_size=2, mlp_ratio=4,
               num_classes=16)
    key = jax.random.PRNGKey(0)
    pkey, xkey = jax.random.split(key)
    params = build_params(pkey, cfg)
    x = jax.random.normal(xkey, (2, cfg["in_chans"], cfg["img_size"], cfg["img_size"]),
                          jnp.float32)
    cls, feat = encoder_svit_forward(params, x, cfg)
    jax.block_until_ready((cls, feat))
    assert cls.shape == (2, cfg["num_classes"])
    assert feat.shape == (2, params["num_features"])
    print("KERNEL_OK")
</pallas_src>

<mosaic_0001>
module attributes {stable_mosaic.version = 11 : i64} {
  func.func @_linear_kernel(%arg0: i32, %arg1: i32, %arg2: i32, %arg3: memref<32x48xbf16, #tpu.memory_space<vmem>>, %arg4: memref<48x32xbf16, #tpu.memory_space<vmem>>, %arg5: memref<1x32xf32, #tpu.memory_space<vmem>>, %arg6: memref<32x32xbf16, #tpu.memory_space<vmem>>) attributes {dimension_semantics = [#tpu.dimension_semantics<parallel>, #tpu.dimension_semantics<parallel>, #tpu.dimension_semantics<arbitrary>], iteration_bounds = array<i64: 1, 1, 1>, scalar_prefetch = 0 : i64, scratch_operands = 0 : i64, tpu.core_type = #tpu.core_type<tc>, window_params = [{transform_indices = @transform_0, window_bounds = array<i64: 32, 48>}, {transform_indices = @transform_1, window_bounds = array<i64: 48, 32>}, {transform_indices = @transform_2, window_bounds = array<i64: 1, 32>}, {transform_indices = @transform_3, window_bounds = array<i64: 32, 32>}]} {
    %c0 = arith.constant 0 : index
    %c0_0 = arith.constant 0 : index
    %0 = vector.load %arg3[%c0, %c0_0] : memref<32x48xbf16, #tpu.memory_space<vmem>>, vector<32x48xbf16>
    %c0_1 = arith.constant 0 : index
    %c0_2 = arith.constant 0 : index
    %1 = vector.load %arg4[%c0_1, %c0_2] : memref<48x32xbf16, #tpu.memory_space<vmem>>, vector<48x32xbf16>
    %cst = arith.constant dense<0.000000e+00> : vector<32x32xf32>
    %2 = tpu.matmul %0, %1, %cst {dimension_numbers = #tpu.dot_dimension_numbers<[1], [0], [0], [1], [0, 0, 1, 1], [], []>} : vector<32x48xbf16>, vector<48x32xbf16>, vector<32x32xf32> -> vector<32x32xf32>
    %c0_3 = arith.constant 0 : index
    %c0_4 = arith.constant 0 : index
    %3 = vector.load %arg5[%c0_3, %c0_4] : memref<1x32xf32, #tpu.memory_space<vmem>>, vector<1x32xf32>
    %4 = vector.broadcast %3 : vector<1x32xf32> to vector<32x32xf32>
    %5 = arith.addf %2, %4 : vector<32x32xf32>
    %6 = arith.truncf %5 : vector<32x32xf32> to vector<32x32xbf16>
    %c0_5 = arith.constant 0 : index
    %c0_6 = arith.constant 0 : index
    %7 = vector.load %arg6[%c0_5, %c0_6] : memref<32x32xbf16, #tpu.memory_space<vmem>>, vector<32x32xbf16>
    tpu.vector_store %arg6[%c0_5, %c0_6], %6 {strides = array<i32>} : memref<32x32xbf16, #tpu.memory_space<vmem>>, vector<32x32xbf16>,
    return
  }
  func.func @transform_0(%arg0: i32, %arg1: i32, %arg2: i32) -> (i32, i32) {
    %c0_i32 = arith.constant 0 : i32
    return %arg0, %arg2 : i32, i32
  }
  func.func @transform_1(%arg0: i32, %arg1: i32, %arg2: i32) -> (i32, i32) {
    %c0_i32 = arith.constant 0 : i32
    return %arg2, %arg1 : i32, i32
  }
  func.func @transform_2(%arg0: i32, %arg1: i32, %arg2: i32) -> (i32, i32) {
    %c0_i32 = arith.constant 0 : i32
    %c0_i32_0 = arith.constant 0 : i32
    return %c0_i32, %arg1 : i32, i32
  }
  func.func @transform_3(%arg0: i32, %arg1: i32, %arg2: i32) -> (i32, i32) {
    %c0_i32 = arith.constant 0 : i32
    return %arg0, %arg1 : i32, i32
  }
}

</mosaic_0001>

<bundles_post_ra>
// kernel: tpu_custom_call.1
= control target key start
LH: loop header
LB: loop body
LE: loop exit
PB: predicated region body
PF: predicated region fallthrough
CT: control target
= control target key end

     0   :  { %s219_s0 = inlined_call_operand.vmem [shape: bf16[32,48], index: 0, kind: input, shape index: {}]   ;;  %s220_s1 = inlined_call_operand.vmem [shape: bf16[48,32], index: 1, kind: input, shape index: {}]   ;;  %s221_s2 = inlined_call_operand.vmem [shape: f32[1,32], index: 2, kind: input, shape index: {}]   ;;  %s222_s3 = inlined_call_operand.hbm [shape: bf16[32,32], index: 3, kind: output, shape index: {}]  }
   0x1   :  { %v137_v0 = vld [vmem:[%s220_s1 + $0x10] sm:$0xff]  ;;  %v136_v1 = vld [vmem:[%s220_s1 + $0x8] sm:$0xff] }
   0x2   :  { %70 = vmatpush.bf16.msra.mxu0 %v137_v0  ;;  %138 = vmatpush.bf16.msra.mxu1 %v137_v0 }
   0x3   :  { %8 = vsyncpa [#allocation3], 0  ;;  %v135_v2 = vld [vmem:[%s220_s1] sm:$0xff]  ;;  %v134_v4 = vld [vmem:[%s219_s0 + $0x8] sm:$0xff]  ;;  %vm58_vm0 = vcmask 392192   ;;  %vm88_vm1 = vcmask 257024  }
   0x4   :  { %v133_v3 = vld [vmem:[%s219_s0] sm:$0xff]  ;;  %s171_s0 = smov [#allocation2]   ;;  %s99_s26 = sshll.u32 %s222_s3, 4  ;;  %s100_s26 = int_to_ptr.hbm [resolvable:$true] %s99_s26 }
   0x5   :  { %v144_v5 = vld [vmem:[%s221_s2] ss:$0 sm:$0xff]  ;;  %s97_s1 = sshll.u32 %s171_s0, 4  ;;  %s172_s2 = smov 64   ;;  %s98_s1 = int_to_ptr.vmem [resolvable:$true] %s97_s1 }
   0x6   :  { %71 = vmatpush.bf16.msra.mxu0 %v136_v1  ;;  %139 = vmatpush.bf16.msra.mxu1 %v136_v1  ;;  %s173_s27 = smov 4  }
   0xa   :  { %72 = vmatpush.bf16.msra.mxu0 %v135_v2  ;;  %140 = vmatpush.bf16.msra.mxu1 %v135_v2 }
   0xd   :  { %131 = vmatmul.msk.bf16.vlgmr.msra.gmra.mxu0 %vm58_vm0, %v133_v3  ;;  %132 = vmatmul.msk.bf16.vlgmr.msra.gmra.mxu1 %vm58_vm0, %v134_v4 }
  0x8a   :  { %v74_v6 = vpop.f32.mrf.mxu0  ;;  %v79_v7 = vpop.f32.mrf.mxu1 }
  0x8b   :  { %v75_v8 = vadd.f32 %v144_v5, %v74_v6  ;;  %v80_v9 = vadd.f32 %v144_v5, %v79_v7 }
  0x8d   :  { %v84_v10 = vpack.c.bf16 %v75_v8, %v75_v8  ;;  %v86_v11 = vpack.c.bf16 %v80_v9, %v80_v9 }
  0x8f   :  { %89 = vst.msk [vmem:[#allocation2] sm:$0xf] %vm88_vm1, %v84_v10 }
  0x90   :  { %91 = vst.msk [vmem:[#allocation2 + $0x8] sm:$0xf] %vm88_vm1, %v86_v11 }
  0x92   :  { %v76_v12 = vpop.f32.mrf.mxu0  ;;  %v81_v13 = vpop.f32.mrf.mxu1 }
  0x93   :  { %v77_v14 = vadd.f32 %v144_v5, %v76_v12  ;;  %v82_v15 = vadd.f32 %v144_v5, %v81_v13 }
  0x95   :  { %v85_v16 = vpack.c.bf16 %v77_v14, %v77_v14  ;;  %v87_v17 = vpack.c.bf16 %v82_v15, %v82_v15 }
  0x97   :  { %90 = vst.msk [vmem:[#allocation2 + $0x4] sm:$0xf] %vm88_vm1, %v85_v16 }
  0x98   :  { %92 = vst.msk [vmem:[#allocation2 + $0xc] sm:$0xf] %vm88_vm1, %v87_v17 }
  0x99   :  { %105 = dma.vmem_to_hbm [thread:$0]  %s98_s1, 256, %s100_s26, [#allocation3], %s172_s2, %s172_s2, %s173_s27  }
  0x9a   :  { %169 = dma.done.wait [#allocation3], 256  }
  0x9b   :  { %170 = vsyncadd [#allocation3], 4294967040 }
  0x9c   :  { %110 = vsyncpa [#allocation3], 1 }

</bundles_post_ra>
